<compile_context>
chip_gen: v7x
topology: tpu7x:2x2x1
jax: 0.10.0
libtpu: 0.0.40
codegen_flags: <defaults>
</compile_context>

<pallas_src>
import jax
import jax.numpy as jnp
from jax.experimental import pallas as pl
from jax.experimental.pallas import tpu as pltpu


# ---------------------------------------------------------------------------
# "cfg.predicts" — prediction code dict {name: dim}, as in concrete encoders.
# ---------------------------------------------------------------------------
PREDICTS = {
    "shapecode": 8,
    "expcode": 8,
    "texcode": 8,
    "posecode": 3,
    "cam": 3,
    "lightcode": 2,
}
CODE_DIM = sum(PREDICTS.values())      # == 32
HIDDEN_DIM = 64                        # kept un-padded (block last dim == full dim)
K_PAD = 128                            # code output lane-padded (epilogue only, cheap)


def _round_up(x, m):
    return (x + m - 1) // m * m


def _choose_tk(d_pad, target):
    """Largest multiple-of-128 divisor of d_pad that is <= target."""
    n = d_pad // 128
    cap = max(1, min(target // 128, n))
    for m in range(cap, 0, -1):
        if n % m == 0:
            return m * 128
    return 128


# ---------------------------------------------------------------------------
# Pallas kernel factory.
#   grid = (batch_tiles, k_tiles)   -- ("parallel", "arbitrary")
#   acc (f32, VMEM scratch) accumulates x_tile @ w1_tile over the K axis;
#   it starts at broadcast(b1); ReLU + tiny second matmul + stores run once
#   on the last K step.
# ---------------------------------------------------------------------------
def _make_kernel(with_features):
    def kernel(x_ref, w1_ref, b1_ref, w2_ref, b2_ref, *refs):
        if with_features:
            feat_ref, code_ref, acc_ref = refs
        else:
            code_ref, acc_ref = refs

        k = pl.program_id(1)

        @pl.when(k == 0)
        def _():
            # start accumulator at the bias -> no epilogue add needed
            acc_ref[...] = jnp.broadcast_to(b1_ref[...], acc_ref.shape)

        # per-tile cast to bf16 inside the kernel (x streamed untouched from
        # HBM); bf16 x bf16 -> f32 accumulate on the MXU.
        acc_ref[...] += jnp.dot(x_ref[...].astype(jnp.bfloat16), w1_ref[...],
                                preferred_element_type=jnp.float32)

        @pl.when(k == pl.num_programs(1) - 1)
        def _():
            h = jnp.maximum(acc_ref[...], 0.0)                 # (b_tile, 64)
            if with_features:
                feat_ref[...] = h
            c = jnp.dot(h.astype(w2_ref.dtype), w2_ref[...],
                        preferred_element_type=jnp.float32)    # (b_tile, K_PAD)
            code_ref[...] = c + b2_ref[...]

    return kernel


def face_encoder_forward(x_nchw, params, return_features=False, *, tk=8192):
    """Forward pass of the (concrete) face encoder.

    x_nchw: (B, C, H, W) float image batch (PyTorch NCHW convention).
    params: dict from init_params (weights pre-cast/pre-padded once).
    Returns a dict of prediction codes (and 'features' if requested).
    """
    B = x_nchw.shape[0]
    x_flat = x_nchw.reshape(B, -1)                    # torch x.view(B, -1)
    D = x_flat.shape[1]
    D_pad = _round_up(D, 128)
    assert params["w1"].shape[0] == D_pad, "params built for a different input dim"

    if D_pad != D:
        # TODO(synk): rare path — ideally upstream supplies a 128-aligned
        # flattened feature dim so no wrapper-side copy of x is needed.
        x_flat = jnp.pad(x_flat, ((0, 0), (0, D_pad - D)))

    # --- batch tiling: one tile for small B, 256-row tiles for large B -----
    B_pad8 = _round_up(max(B, 1), 8)
    b_tile = B_pad8 if B_pad8 <= 256 else 256
    B_pad = _round_up(B, b_tile)
    if B_pad != B:
        x_flat = jnp.pad(x_flat, ((0, B_pad - B), (0, 0)))

    # --- reduction tiling: large tk, snapped to a divisor of D_pad ---------
    tk = _choose_tk(D_pad, max(128, tk))
    grid = (B_pad // b_tile, D_pad // tk)

    in_specs = [
        pl.BlockSpec((b_tile, tk), lambda b, k: (b, k)),          # x (original dtype)
        pl.BlockSpec((tk, HIDDEN_DIM), lambda b, k: (k, 0)),      # w1 bf16 (D_pad, 64)
        pl.BlockSpec((1, HIDDEN_DIM), lambda b, k: (0, 0)),       # b1 f32
        pl.BlockSpec((HIDDEN_DIM, K_PAD), lambda b, k: (0, 0)),   # w2 bf16
        pl.BlockSpec((1, K_PAD), lambda b, k: (0, 0)),            # b2 f32
    ]

    code_shape = jax.ShapeDtypeStruct((B_pad, K_PAD), jnp.float32)
    code_spec = pl.BlockSpec((b_tile, K_PAD), lambda b, k: (b, 0))
    if return_features:
        out_shape = (jax.ShapeDtypeStruct((B_pad, HIDDEN_DIM), jnp.float32),
                     code_shape)
        out_specs = [pl.BlockSpec((b_tile, HIDDEN_DIM), lambda b, k: (b, 0)),
                     code_spec]
    else:
        out_shape = (code_shape,)
        out_specs = [code_spec]

    n_batch_tiles = B_pad // b_tile
    x_bytes = x_flat.size * x_flat.dtype.itemsize
    w_bytes = (params["w1"].size * 2) * n_batch_tiles \
        + params["w2"].size * 2 + params["b1"].size * 4 + params["b2"].size * 4
    out_bytes = sum(s.size * 4 for s in out_shape)
    cost = pl.CostEstimate(
        flops=2 * B_pad * D_pad * HIDDEN_DIM + 2 * B_pad * HIDDEN_DIM * K_PAD,
        transcendentals=0,
        bytes_accessed=x_bytes + w_bytes + out_bytes,
    )

    outs = pl.pallas_call(
        _make_kernel(return_features),
        out_shape=out_shape,
        grid_spec=pltpu.PrefetchScalarGridSpec(
            num_scalar_prefetch=0,
            grid=grid,
            in_specs=in_specs,
            out_specs=out_specs,
            scratch_shapes=[pltpu.VMEM((b_tile, HIDDEN_DIM), jnp.float32)],
        ),
        compiler_params=pltpu.CompilerParams(
            dimension_semantics=("parallel", "arbitrary"),
            # <= 48 MiB keeps full double-buffering on v7x's 64 MiB VMEM while
            # still well above v5e's 16 MiB default scoped limit.
            vmem_limit_bytes=48 * 1024 * 1024,
        ),
        cost_estimate=cost,
    )(x_flat, params["w1"], params["b1"], params["w2"], params["b2"])

    if return_features:
        feat_p, code_p = outs
    else:
        (code_p,) = outs
        feat_p = None

    code = code_p[:B, :CODE_DIM]

    # Split codevector into the prediction code dict (glue, plain JAX).
    out = {}
    off = 0
    for name, dim in PREDICTS.items():
        out[name] = code[:, off:off + dim]
        off += dim
    if return_features:
        out["features"] = feat_p[:B, :HIDDEN_DIM]
    return out


def init_params(key, in_dim):
    """Weights are cast to bf16 and padded ONCE here (not per forward call)."""
    d_pad = _round_up(in_dim, 128)
    k1, k2, k3, k4 = jax.random.split(key, 4)
    w1 = jax.random.normal(k1, (in_dim, HIDDEN_DIM), jnp.float32) * 0.02
    w2 = jax.random.normal(k3, (HIDDEN_DIM, CODE_DIM), jnp.float32) * 0.02
    b2 = jax.random.normal(k4, (1, CODE_DIM), jnp.float32) * 0.01
    return {
        "w1": jnp.zeros((d_pad, HIDDEN_DIM), jnp.bfloat16)
              .at[:in_dim].set(w1.astype(jnp.bfloat16)),
        "b1": jax.random.normal(k2, (1, HIDDEN_DIM), jnp.float32) * 0.01,
        "w2": jnp.zeros((HIDDEN_DIM, K_PAD), jnp.bfloat16)
              .at[:, :CODE_DIM].set(w2.astype(jnp.bfloat16)),
        "b2": jnp.zeros((1, K_PAD), jnp.float32).at[:, :CODE_DIM].set(b2),
    }


def _reference(x_nchw, params):
    """Pure-JAX reference (mirrors the kernel's bf16 operand precision)."""
    B = x_nchw.shape[0]
    x = x_nchw.reshape(B, -1)
    D = x.shape[1]
    xb = x.astype(jnp.bfloat16).astype(jnp.float32)
    w1 = params["w1"][:D, :].astype(jnp.float32)
    w2 = params["w2"][:, :CODE_DIM].astype(jnp.float32)
    b2 = params["b2"][:, :CODE_DIM]
    h = jnp.maximum(xb @ w1 + params["b1"], 0.0)
    c = h.astype(jnp.bfloat16).astype(jnp.float32) @ w2 + b2
    return h, c


if __name__ == "__main__":
    key = jax.random.PRNGKey(0)
    kx, kp = jax.random.split(key)

    B, C, H, W = 2, 4, 16, 16
    x = jax.random.normal(kx, (B, C, H, W), jnp.float32)
    params = init_params(kp, C * H * W)

    out = face_encoder_forward(x, params, return_features=True)
    jax.block_until_ready(out)

    # also exercise the no-features (inference) variant
    out_nf = face_encoder_forward(x, params, return_features=False)
    jax.block_until_ready(out_nf)

    # sanity check against pure-JAX reference
    ref_feat, ref_code = _reference(x, params)
    code = jnp.concatenate([out[name] for name in PREDICTS], axis=-1)
    code_nf = jnp.concatenate([out_nf[name] for name in PREDICTS], axis=-1)
    assert jnp.allclose(out["features"], ref_feat, atol=1e-2, rtol=1e-2)
    assert jnp.allclose(code, ref_code, atol=1e-2, rtol=1e-2)
    assert jnp.allclose(code_nf, ref_code, atol=1e-2, rtol=1e-2)
    for name, dim in PREDICTS.items():
        assert out[name].shape == (B, dim)
    assert out["features"].shape == (B, HIDDEN_DIM)

    print("KERNEL_OK")
</pallas_src>

<mosaic_0001>
module attributes {stable_mosaic.version = 11 : i64} {
  func.func @kernel(%arg0: i32, %arg1: i32, %arg2: memref<8x1024xf32, #tpu.memory_space<vmem>>, %arg3: memref<1024x64xbf16, #tpu.memory_space<vmem>>, %arg4: memref<1x64xf32, #tpu.memory_space<vmem>>, %arg5: memref<64x128xbf16, #tpu.memory_space<vmem>>, %arg6: memref<1x128xf32, #tpu.memory_space<vmem>>, %arg7: memref<8x64xf32, #tpu.memory_space<vmem>>, %arg8: memref<8x128xf32, #tpu.memory_space<vmem>>, %arg9: memref<8x64xf32, #tpu.memory_space<vmem>>) attributes {dimension_semantics = [#tpu.dimension_semantics<parallel>, #tpu.dimension_semantics<arbitrary>], iteration_bounds = array<i64: 1, 1>, scalar_prefetch = 0 : i64, scratch_operands = 1 : i64, tpu.core_type = #tpu.core_type<tc>, window_params = [{transform_indices = @transform_0, window_bounds = array<i64: 8, 1024>}, {transform_indices = @transform_1, window_bounds = array<i64: 1024, 64>}, {pipeline_mode = #tpu.pipeline_mode<synchronous>, transform_indices = @transform_2, window_bounds = array<i64: 1, 64>}, {pipeline_mode = #tpu.pipeline_mode<synchronous>, transform_indices = @transform_3, window_bounds = array<i64: 64, 128>}, {pipeline_mode = #tpu.pipeline_mode<synchronous>, transform_indices = @transform_4, window_bounds = array<i64: 1, 128>}, {transform_indices = @transform_5, window_bounds = array<i64: 8, 64>}, {transform_indices = @transform_6, window_bounds = array<i64: 8, 128>}]} {
    %c0_i32 = arith.constant 0 : i32
    %0 = arith.cmpi eq, %arg1, %c0_i32 : i32
    %1 = arith.extui %0 : i1 to i32
    %c0_i32_0 = arith.constant 0 : i32
    %2 = arith.cmpi ne, %1, %c0_i32_0 : i32
    scf.if %2 {
      %c0_10 = arith.constant 0 : index
      %c0_11 = arith.constant 0 : index
      %13 = vector.load %arg4[%c0_10, %c0_11] : memref<1x64xf32, #tpu.memory_space<vmem>>, vector<1x64xf32>
      %14 = vector.shape_cast %13 : vector<1x64xf32> to vector<1x64xf32>
      %15 = vector.broadcast %14 : vector<1x64xf32> to vector<8x64xf32>
      %c0_12 = arith.constant 0 : index
      %c0_13 = arith.constant 0 : index
      %16 = vector.load %arg9[%c0_12, %c0_13] : memref<8x64xf32, #tpu.memory_space<vmem>>, vector<8x64xf32>
      tpu.vector_store %arg9[%c0_12, %c0_13], %15 {strides = array<i32>} : memref<8x64xf32, #tpu.memory_space<vmem>>, vector<8x64xf32>,
    } else {
    }
    %c0 = arith.constant 0 : index
    %c0_1 = arith.constant 0 : index
    %3 = vector.load %arg9[%c0, %c0_1] : memref<8x64xf32, #tpu.memory_space<vmem>>, vector<8x64xf32>
    %c0_2 = arith.constant 0 : index
    %c0_3 = arith.constant 0 : index
    %4 = vector.load %arg2[%c0_2, %c0_3] : memref<8x1024xf32, #tpu.memory_space<vmem>>, vector<8x1024xf32>
    %5 = arith.truncf %4 : vector<8x1024xf32> to vector<8x1024xbf16>
    %c0_4 = arith.constant 0 : index
    %c0_5 = arith.constant 0 : index
    %6 = vector.load %arg3[%c0_4, %c0_5] : memref<1024x64xbf16, #tpu.memory_space<vmem>>, vector<1024x64xbf16>
    %cst = arith.constant dense<0.000000e+00> : vector<8x64xf32>
    %7 = tpu.matmul %5, %6, %cst {dimension_numbers = #tpu.dot_dimension_numbers<[1], [0], [0], [1], [0, 0, 1, 1], [], []>} : vector<8x1024xbf16>, vector<1024x64xbf16>, vector<8x64xf32> -> vector<8x64xf32>
    %8 = arith.addf %3, %7 : vector<8x64xf32>
    %c0_6 = arith.constant 0 : index
    %c0_7 = arith.constant 0 : index
    %9 = vector.load %arg9[%c0_6, %c0_7] : memref<8x64xf32, #tpu.memory_space<vmem>>, vector<8x64xf32>
    tpu.vector_store %arg9[%c0_6, %c0_7], %8 {strides = array<i32>} : memref<8x64xf32, #tpu.memory_space<vmem>>, vector<8x64xf32>,
    %c0_i32_8 = arith.constant 0 : i32
    %10 = arith.cmpi eq, %arg1, %c0_i32_8 : i32
    %11 = arith.extui %10 : i1 to i32
    %c0_i32_9 = arith.constant 0 : i32
    %12 = arith.cmpi ne, %11, %c0_i32_9 : i32
    scf.if %12 {
      %c0_10 = arith.constant 0 : index
      %c0_11 = arith.constant 0 : index
      %13 = vector.load %arg9[%c0_10, %c0_11] : memref<8x64xf32, #tpu.memory_space<vmem>>, vector<8x64xf32>
      %cst_12 = arith.constant 0.000000e+00 : f32
      %14 = vector.broadcast %cst_12 : f32 to vector<8x64xf32>
      %15 = arith.maximumf %13, %14 : vector<8x64xf32>
      %c0_13 = arith.constant 0 : index
      %c0_14 = arith.constant 0 : index
      %16 = vector.load %arg7[%c0_13, %c0_14] : memref<8x64xf32, #tpu.memory_space<vmem>>, vector<8x64xf32>
      tpu.vector_store %arg7[%c0_13, %c0_14], %15 {strides = array<i32>} : memref<8x64xf32, #tpu.memory_space<vmem>>, vector<8x64xf32>,
      %17 = arith.truncf %15 : vector<8x64xf32> to vector<8x64xbf16>
      %c0_15 = arith.constant 0 : index
      %c0_16 = arith.constant 0 : index
      %18 = vector.load %arg5[%c0_15, %c0_16] : memref<64x128xbf16, #tpu.memory_space<vmem>>, vector<64x128xbf16>
      %cst_17 = arith.constant dense<0.000000e+00> : vector<8x128xf32>
      %19 = tpu.matmul %17, %18, %cst_17 {dimension_numbers = #tpu.dot_dimension_numbers<[1], [0], [0], [1], [0, 0, 1, 1], [], []>} : vector<8x64xbf16>, vector<64x128xbf16>, vector<8x128xf32> -> vector<8x128xf32>
      %c0_18 = arith.constant 0 : index
      %c0_19 = arith.constant 0 : index
      %20 = vector.load %arg6[%c0_18, %c0_19] : memref<1x128xf32, #tpu.memory_space<vmem>>, vector<1x128xf32>
      %21 = vector.broadcast %20 : vector<1x128xf32> to vector<8x128xf32>
      %22 = arith.addf %19, %21 : vector<8x128xf32>
      %c0_20 = arith.constant 0 : index
      %c0_21 = arith.constant 0 : index
      %23 = vector.load %arg8[%c0_20, %c0_21] : memref<8x128xf32, #tpu.memory_space<vmem>>, vector<8x128xf32>
      tpu.vector_store %arg8[%c0_20, %c0_21], %22 {strides = array<i32>} : memref<8x128xf32, #tpu.memory_space<vmem>>, vector<8x128xf32>,
    } else {
    }
    return
  }
  func.func @transform_0(%arg0: i32, %arg1: i32) -> (i32, i32) {
    %c0_i32 = arith.constant 0 : i32
    return %arg0, %arg1 : i32, i32
  }
  func.func @transform_1(%arg0: i32, %arg1: i32) -> (i32, i32) {
    %c0_i32 = arith.constant 0 : i32
    %c0_i32_0 = arith.constant 0 : i32
    return %arg1, %c0_i32 : i32, i32
  }
  func.func @transform_2(%arg0: i32, %arg1: i32) -> (i32, i32) {
    %c0_i32 = arith.constant 0 : i32
    %c0_i32_0 = arith.constant 0 : i32
    %c0_i32_1 = arith.constant 0 : i32
    return %c0_i32, %c0_i32_0 : i32, i32
  }
  func.func @transform_3(%arg0: i32, %arg1: i32) -> (i32, i32) {
    %c0_i32 = arith.constant 0 : i32
    %c0_i32_0 = arith.constant 0 : i32
    %c0_i32_1 = arith.constant 0 : i32
    return %c0_i32, %c0_i32_0 : i32, i32
  }
  func.func @transform_4(%arg0: i32, %arg1: i32) -> (i32, i32) {
    %c0_i32 = arith.constant 0 : i32
    %c0_i32_0 = arith.constant 0 : i32
    %c0_i32_1 = arith.constant 0 : i32
    return %c0_i32, %c0_i32_0 : i32, i32
  }
  func.func @transform_5(%arg0: i32, %arg1: i32) -> (i32, i32) {
    %c0_i32 = arith.constant 0 : i32
    %c0_i32_0 = arith.constant 0 : i32
    return %arg0, %c0_i32 : i32, i32
  }
  func.func @transform_6(%arg0: i32, %arg1: i32) -> (i32, i32) {
    %c0_i32 = arith.constant 0 : i32
    %c0_i32_0 = arith.constant 0 : i32
    return %arg0, %c0_i32 : i32, i32
  }
}

</mosaic_0001>

<bundles_post_ra>
// kernel: tpu_custom_call.1
= control target key start
LH: loop header
LB: loop body
LE: loop exit
PB: predicated region body
PF: predicated region fallthrough
CT: control target
= control target key end

     0   :  { %12 = vsyncpa [#allocation4], 0  ;;  %s1445_s0 = inlined_call_operand.vmem [shape: f32[8,1024], index: 0, kind: input, shape index: {}]   ;;  %s1446_s1 = inlined_call_operand.vmem [shape: bf16[1024,64], index: 1, kind: input, shape index: {}]   ;;  %s1447_s2 = inlined_call_operand.vmem [shape: f32[1,64], index: 2, kind: input, shape index: {}]   ;;  %s1448_s3 = inlined_call_operand.vmem [shape: bf16[64,128], index: 3, kind: input, shape index: {}]   ;;  %s1449_s4 = inlined_call_operand.vmem [shape: f32[1,128], index: 4, kind: input, shape index: {}]   ;;  %s1450_s5 = inlined_call_operand.hbm [shape: f32[8,64], index: 5, kind: output, shape index: {0}]   ;;  %s1451_s6 = inlined_call_operand.hbm [shape: f32[8,128], index: 6, kind: output, shape index: {1}]  }
   0x1   :  { %v1028_v0 = vld [vmem:[%s1446_s1 + $0x40] sm:$0xff]   ;;  %v1032_v4 = vld [vmem:[%s1446_s1 + $0x48] sm:$0xff]   ;;  %v1036_v8 = vld [vmem:[%s1446_s1 + $0x50] sm:$0xff]  }
   0x2   :  { %v1029_v1 = vld [vmem:[%s1446_s1 + $0xc0] sm:$0xff]   ;;  %919 = vmatprep.subr.bf16.mxu0 %v1028_v0  ;;  %v1033_v5 = vld [vmem:[%s1446_s1 + $0xc8] sm:$0xff]   ;;  %v1037_v9 = vld [vmem:[%s1446_s1 + $0xd0] sm:$0xff]  }
   0x3   :  { %v1030_v2 = vld [vmem:[%s1446_s1] sm:$0xff]   ;;  %941 = vmatprep.subr.bf16.mxu1 %v1029_v1  ;;  %v1034_v6 = vld [vmem:[%s1446_s1 + $0x8] sm:$0xff]   ;;  %v1038_v10 = vld [vmem:[%s1446_s1 + $0x10] sm:$0xff]  }
   0x4   :  { %v1031_v3 = vld [vmem:[%s1446_s1 + $0x80] sm:$0xff]   ;;  %920 = vmatpush3.bf16.msra.mxu0 %v1030_v2  ;;  %v1035_v7 = vld [vmem:[%s1446_s1 + $0x88] sm:$0xff]   ;;  %v1039_v11 = vld [vmem:[%s1446_s1 + $0x90] sm:$0xff]  }
   0x5   :  { %942 = vmatpush3.bf16.msra.mxu1 %v1031_v3  ;;  %921 = vmatprep.subr.bf16.mxu0 %v1032_v4  ;;  %v1040_v12 = vld [vmem:[%s1446_s1 + $0x58] sm:$0xff]   ;;  %v1044_v16 = vld [vmem:[%s1446_s1 + $0x60] sm:$0xff]   ;;  %v1048_v20 = vld [vmem:[%s1446_s1 + $0x68] sm:$0xff]  }
   0x6   :  { %943 = vmatprep.subr.bf16.mxu1 %v1033_v5  ;;  %v1041_v13 = vld [vmem:[%s1446_s1 + $0xd8] sm:$0xff]   ;;  %v1045_v17 = vld [vmem:[%s1446_s1 + $0xe0] sm:$0xff]   ;;  %v1049_v21 = vld [vmem:[%s1446_s1 + $0xe8] sm:$0xff]  }
   0x7   :  { %v1042_v14 = vld [vmem:[%s1446_s1 + $0x18] sm:$0xff]   ;;  %v1046_v18 = vld [vmem:[%s1446_s1 + $0x20] sm:$0xff]   ;;  %v1050_v22 = vld [vmem:[%s1446_s1 + $0x28] sm:$0xff]  }
   0x8   :  { %922 = vmatpush3.bf16.msra.mxu0 %v1034_v6  ;;  %v1043_v15 = vld [vmem:[%s1446_s1 + $0x98] sm:$0xff]   ;;  %v1047_v19 = vld [vmem:[%s1446_s1 + $0xa0] sm:$0xff]   ;;  %v1051_v23 = vld [vmem:[%s1446_s1 + $0xa8] sm:$0xff]  }
   0x9   :  { %944 = vmatpush3.bf16.msra.mxu1 %v1035_v7  ;;  %923 = vmatprep.subr.bf16.mxu0 %v1036_v8  ;;  %v1052_v24 = vld [vmem:[%s1446_s1 + $0x70] sm:$0xff]   ;;  %v1056_v28 = vld [vmem:[%s1446_s1 + $0x78] sm:$0xff]   ;;  %v40_v32 = vld [vmem:[%s1445_s0 + $0x8] sm:$0xff] }
   0xa   :  { %945 = vmatprep.subr.bf16.mxu1 %v1037_v9  ;;  %v1053_v25 = vld [vmem:[%s1446_s1 + $0xf0] sm:$0xff]   ;;  %v1057_v29 = vld [vmem:[%s1446_s1 + $0xf8] sm:$0xff]   ;;  %v39_v34 = vld [vmem:[%s1445_s0] sm:$0xff]  ;;  %v48_v35 = vpack.c.bf16 %v40_v32, %v40_v32 }
   0xb   :  { %v1054_v26 = vld [vmem:[%s1446_s1 + $0x30] sm:$0xff]   ;;  %v1058_v30 = vld [vmem:[%s1446_s1 + $0x38] sm:$0xff]   ;;  %v47_v37 = vpack.c.bf16 %v39_v34, %v39_v34  ;;  %v1060_v40 = vld [vmem:[%s1446_s1 + $0x140] sm:$0xff]  }
   0xc   :  { %924 = vmatpush3.bf16.msra.mxu0 %v1038_v10  ;;  %v1055_v27 = vld [vmem:[%s1446_s1 + $0xb0] sm:$0xff]   ;;  %v1059_v31 = vld [vmem:[%s1446_s1 + $0xb8] sm:$0xff]   ;;  %599 = vmatprep.mubr.bf16.mxu0 %v48_v35  ;;  %v1061_v41 = vld [vmem:[%s1446_s1 + $0x1c0] sm:$0xff]  }
   0xd   :  { %946 = vmatpush3.bf16.msra.mxu1 %v1039_v11  ;;  %925 = vmatprep.subr.bf16.mxu0 %v1040_v12  ;;  %v42_v33 = vld [vmem:[%s1445_s0 + $0x18] sm:$0xff]  ;;  %v41_v38 = vld [vmem:[%s1445_s0 + $0x10] sm:$0xff]  ;;  %v1062_v42 = vld [vmem:[%s1446_s1 + $0x100] sm:$0xff]  }
   0xe   :  { %947 = vmatprep.subr.bf16.mxu1 %v1041_v13  ;;  %v50_v36 = vpack.c.bf16 %v42_v33, %v42_v33  ;;  %v49_v39 = vpack.c.bf16 %v41_v38, %v41_v38  ;;  %v1063_v43 = vld [vmem:[%s1446_s1 + $0x180] sm:$0xff]   ;;  %v1064_v44 = vld [vmem:[%s1446_s1 + $0x148] sm:$0xff]   ;;  %v1068_v48 = vld [vmem:[%s1446_s1 + $0x150] sm:$0xff]  }
   0xf   :  { %v1065_v45 = vld [vmem:[%s1446_s1 + $0x1c8] sm:$0xff]   ;;  %v1069_v49 = vld [vmem:[%s1446_s1 + $0x1d0] sm:$0xff]   ;;  %v1072_v52 = vld [vmem:[%s1446_s1 + $0x158] sm:$0xff]  }
  0x10   :  { %926 = vmatpush3.bf16.msra.mxu0 %v1042_v14  ;;  %639 = vmatprep.mubr.bf16.mxu1 %v50_v36  ;;  %v1066_v46 = vld [vmem:[%s1446_s1 + $0x108] sm:$0xff]   ;;  %v1070_v50 = vld [vmem:[%s1446_s1 + $0x110] sm:$0xff]   ;;  %v1073_v53 = vld [vmem:[%s1446_s1 + $0x1d8] sm:$0xff]  }
  0x11   :  { %948 = vmatpush3.bf16.msra.mxu1 %v1043_v15  ;;  %927 = vmatprep.subr.bf16.mxu0 %v1044_v16  ;;  %v1067_v47 = vld [vmem:[%s1446_s1 + $0x188] sm:$0xff]   ;;  %v1071_v51 = vld [vmem:[%s1446_s1 + $0x190] sm:$0xff]   ;;  %v1074_v54 = vld [vmem:[%s1446_s1 + $0x118] sm:$0xff]  }
  0x12   :  { %949 = vmatprep.subr.bf16.mxu1 %v1045_v17  ;;  %v1075_v55 = vld [vmem:[%s1446_s1 + $0x198] sm:$0xff]   ;;  %v1076_v56 = vld [vmem:[%s1446_s1 + $0x160] sm:$0xff]   ;;  %v1080_v60 = vld [vmem:[%s1446_s1 + $0x168] sm:$0xff]  }
  0x13   :  { %v1077_v57 = vld [vmem:[%s1446_s1 + $0x1e0] sm:$0xff]   ;;  %v1081_v61 = vld [vmem:[%s1446_s1 + $0x1e8] sm:$0xff]   ;;  %v1084_v0 = vld [vmem:[%s1446_s1 + $0x170] sm:$0xff]  }
  0x14   :  { %928 = vmatpush3.bf16.msra.mxu0 %v1046_v18  ;;  %v1078_v58 = vld [vmem:[%s1446_s1 + $0x120] sm:$0xff]   ;;  %v1082_v62 = vld [vmem:[%s1446_s1 + $0x128] sm:$0xff]   ;;  %v1085_v1 = vld [vmem:[%s1446_s1 + $0x1f0] sm:$0xff]  }
  0x15   :  { %950 = vmatpush3.bf16.msra.mxu1 %v1047_v19  ;;  %929 = vmatprep.subr.bf16.mxu0 %v1048_v20  ;;  %v1079_v59 = vld [vmem:[%s1446_s1 + $0x1a0] sm:$0xff]   ;;  %v1083_v63 = vld [vmem:[%s1446_s1 + $0x1a8] sm:$0xff]   ;;  %v1086_v2 = vld [vmem:[%s1446_s1 + $0x130] sm:$0xff]  }
  0x16   :  { %951 = vmatprep.subr.bf16.mxu1 %v1049_v21  ;;  %v1087_v3 = vld [vmem:[%s1446_s1 + $0x1b0] sm:$0xff]   ;;  %v1088_v4 = vld [vmem:[%s1446_s1 + $0x178] sm:$0xff]   ;;  %v44_v8 = vld [vmem:[%s1445_s0 + $0x28] sm:$0xff] }
  0x17   :  { %v1089_v5 = vld [vmem:[%s1446_s1 + $0x1f8] sm:$0xff]   ;;  %v52_v10 = vpack.c.bf16 %v44_v8, %v44_v8  ;;  %v43_v12 = vld [vmem:[%s1445_s0 + $0x20] sm:$0xff]  ;;  %v45_v13 = vld [vmem:[%s1445_s0 + $0x30] sm:$0xff] }
  0x18   :  { %930 = vmatpush3.bf16.msra.mxu0 %v1050_v22  ;;  %v1090_v6 = vld [vmem:[%s1446_s1 + $0x138] sm:$0xff]   ;;  %v51_v14 = vpack.c.bf16 %v43_v12, %v43_v12  ;;  %v53_v15 = vpack.c.bf16 %v45_v13, %v45_v13 }
  0x19   :  { %952 = vmatpush3.bf16.msra.mxu1 %v1051_v23  ;;  %931 = vmatprep.subr.bf16.mxu0 %v1052_v24  ;;  %v1091_v7 = vld [vmem:[%s1446_s1 + $0x1b8] sm:$0xff]  }
  0x1a   :  { %953 = vmatprep.subr.bf16.mxu1 %v1053_v25  ;;  %v46_v9 = vld [vmem:[%s1445_s0 + $0x38] sm:$0xff] }
  0x1b   :  { %v54_v11 = vpack.c.bf16 %v46_v9, %v46_v9 }
  0x1c   :  { %932 = vmatpush3.bf16.msra.mxu0 %v1054_v26 }
  0x1d   :  { %954 = vmatpush3.bf16.msra.mxu1 %v1055_v27  ;;  %933 = vmatprep.subr.bf16.mxu0 %v1056_v28 }
  0x1e   :  { %955 = vmatprep.subr.bf16.mxu1 %v1057_v29 }
  0x20   :  { %934 = vmatpush3.bf16.msra.mxu0 %v1058_v30 }
  0x21   :  { %956 = vmatpush3.bf16.msra.mxu1 %v1059_v31  ;;  %963 = vmatprep.subr.bf16.mxu0 %v1060_v40 }
  0x22   :  { %985 = vmatprep.subr.bf16.mxu1 %v1061_v41 }
  0x23   :  { %600 = vmatmul.mubr.bf16.vlgmr.msra.gmra.mrb[0].mxu0 %v47_v37 }
  0x24   :  { %640 = vmatmul.mubr.bf16.vlgmr.msra.gmra.mrb[0].mxu1 %v49_v39  ;;  %964 = vmatpush3.bf16.msra.mxu0 %v1062_v42 }
  0x25   :  { %986 = vmatpush3.bf16.msra.mxu1 %v1063_v43  ;;  %965 = vmatprep.subr.bf16.mxu0 %v1064_v44 }
  0x26   :  { %987 = vmatprep.subr.bf16.mxu1 %v1065_v45  ;;  %679 = vmatprep.mubr.bf16.mxu0 %v52_v10 }
  0x27   :  { %719 = vmatprep.mubr.bf16.mxu1 %v54_v11 }
  0x28   :  { %966 = vmatpush3.bf16.msra.mxu0 %v1066_v46 }
  0x29   :  { %988 = vmatpush3.bf16.msra.mxu1 %v1067_v47  ;;  %967 = vmatprep.subr.bf16.mxu0 %v1068_v48 }
  0x2a   :  { %989 = vmatprep.subr.bf16.mxu1 %v1069_v49 }
  0x2c   :  { %968 = vmatpush3.bf16.msra.mxu0 %v1070_v50 }
  0x2d   :  { %990 = vmatpush3.bf16.msra.mxu1 %v1071_v51  ;;  %969 = vmatprep.subr.bf16.mxu0 %v1072_v52 }
  0x2e   :  { %991 = vmatprep.subr.bf16.mxu1 %v1073_v53 }
  0x30   :  { %970 = vmatpush3.bf16.msra.mxu0 %v1074_v54 }
  0x31   :  { %992 = vmatpush3.bf16.msra.mxu1 %v1075_v55  ;;  %971 = vmatprep.subr.bf16.mxu0 %v1076_v56 }
  0x32   :  { %993 = vmatprep.subr.bf16.mxu1 %v1077_v57 }
  0x34   :  { %972 = vmatpush3.bf16.msra.mxu0 %v1078_v58 }
  0x35   :  { %994 = vmatpush3.bf16.msra.mxu1 %v1079_v59  ;;  %973 = vmatprep.subr.bf16.mxu0 %v1080_v60 }
  0x36   :  { %995 = vmatprep.subr.bf16.mxu1 %v1081_v61 }
  0x38   :  { %974 = vmatpush3.bf16.msra.mxu0 %v1082_v62 }
  0x39   :  { %996 = vmatpush3.bf16.msra.mxu1 %v1083_v63  ;;  %975 = vmatprep.subr.bf16.mxu0 %v1084_v0 }
  0x3a   :  { %997 = vmatprep.subr.bf16.mxu1 %v1085_v1 }
  0x3c   :  { %976 = vmatpush3.bf16.msra.mxu0 %v1086_v2 }
  0x3d   :  { %998 = vmatpush3.bf16.msra.mxu1 %v1087_v3  ;;  %977 = vmatprep.subr.bf16.mxu0 %v1088_v4 }
  0x3e   :  { %999 = vmatprep.subr.bf16.mxu1 %v1089_v5 }
  0x40   :  { %978 = vmatpush3.bf16.msra.mxu0 %v1090_v6 }
  0x41   :  { %1000 = vmatpush3.bf16.msra.mxu1 %v1091_v7 }
  0x43   :  { %680 = vmatmul.mubr.bf16.vlgmr.msra.gmra.mrb[4].mxu0 %v51_v14 }
  0x44   :  { %13 = vsyncpa [#allocation6], 0  ;;  %720 = vmatmul.mubr.bf16.vlgmr.msra.gmra.mrb[4].mxu1 %v53_v15  ;;  %v848_v16 = vld [vmem:[%s1447_s2] ss:$0 sm:$0xff]  ;;  %vm36_vm0 = vcmask 523264   ;;  %v1144_v18 = vmov 0.0  }
  0x45   :  { %37 = vst.msk [vmem:[#allocation2] sm:$0xff] %vm36_vm0, %v848_v16  ;;  %v1092_v17 = vld [vmem:[%s1448_s3] sm:$0xff]   ;;  %1012 = vmatprep.subr.bf16.mxu0 %v1144_v18  ;;  %v1093_v19 = vld [vmem:[%s1448_s3 + $0x8] sm:$0xff]   ;;  %vm1145_vm1 = vmmov 0   ;;  %v1094_v20 = vld [vmem:[%s1448_s3 + $0x10] sm:$0xff]  }
  0x46   :  { %1013 = vmatpush3.bf16.msra.mxu0 %v1092_v17  ;;  %1020 = vmatprep.mubr.msk.bf16.mxu0 %vm1145_vm1, %v1144_v18  ;;  %v1095_v21 = vld [vmem:[%s1448_s3 + $0x18] sm:$0xff]   ;;  %s1146_s3 = smov [#allocation3]  }
  0x47   :  { %1014 = vmatprep.subr.bf16.mxu0 %v1144_v18  ;;  %s826_s28 = sshll.u32 %s1146_s3, 4  ;;  %s827_s28 = int_to_ptr.vmem [resolvable:$true] %s826_s28 }
  0x48   :  { %s1096_s29 = scalar_lea.vmem %s827_s28, 128  ;;  %p1101_p1 = scmp.lt.s32.totalorder %s827_s28, %s827_s28 }
  0x49   :  { %p1097_p0 = scmp.ne.s32.totalorder %s827_s28, %s1096_s29  ;;  %p1102_p2 = scmp.lt.s32.totalorder %s1096_s29, %s1096_s29 }
  0x4a   :  { %1015 = vmatpush3.bf16.msra.mxu0 %v1093_v19 }
  0x4b   :  { %1016 = vmatprep.subr.bf16.mxu0 %v1144_v18  ;;  %p1103_p3 = por %p1102_p2, %p1101_p1 }
  0x4c   :  { %v38_v44 = vld [vmem:[#allocation2] sm:$0xff] }
  0x4d   :  { %p1104_p4 = pnand %p1103_p3, %p1097_p0 }
  0x4e   :  { %1017 = vmatpush3.bf16.msra.mxu0 %v1094_v20 }
  0x4f   :  { %1018 = vmatprep.subr.bf16.mxu0 %v1144_v18 }
  0x52   :  { %1019 = vmatpush3.bf16.msra.mxu0 %v1095_v21 }
  0xf6   :  { %v935_v22 = vpop.f32.mrb[0].mxu0 }
  0xf7   :  { %v957_v23 = vpop.f32.mrb[0].mxu1  ;;  %v936_v24 = vpop.f32.mrb[1].mxu0 }
  0xf8   :  { %v958_v25 = vpop.f32.mrb[1].mxu1  ;;  %v937_v26 = vadd.f32 %v936_v24, %v935_v22  ;;  %v938_v28 = vpop.f32.mrb[2].mxu0 }
  0xf9   :  { %v959_v27 = vadd.f32 %v958_v25, %v957_v23  ;;  %v960_v29 = vpop.f32.mrb[2].mxu1  ;;  %v939_v30 = vpop.f32.mrb[3].mxu0 }
  0xfa   :  { %v961_v31 = vpop.f32.mrb[3].mxu1 }
  0xfb   :  { %v642_v32 = vadd.f32 %v959_v27, %v937_v26 }
 0x116   :  { %v979_v33 = vpop.f32.mrb[4].mxu0 }
 0x117   :  { %v1001_v34 = vpop.f32.mrb[4].mxu1  ;;  %v980_v35 = vpop.f32.mrb[5].mxu0 }
 0x118   :  { %v981_v36 = vadd.f32 %v980_v35, %v979_v33  ;;  %v1002_v37 = vpop.f32.mrb[5].mxu1  ;;  %v982_v38 = vpop.f32.mrb[6].mxu0 }
 0x119   :  { %v1003_v39 = vadd.f32 %v1002_v37, %v1001_v34  ;;  %v1004_v40 = vpop.f32.mrb[6].mxu1  ;;  %v983_v41 = vpop.f32.mrb[7].mxu0 }
 0x11a   :  { %v682_v42 = vadd.f32 %v981_v36, %v642_v32  ;;  %v1005_v43 = vpop.f32.mrb[7].mxu1 }
 0x11c   :  { %v722_v45 = vadd.f32 %v1003_v39, %v682_v42 }
 0x11e   :  { %v727_v46 = vadd.f32 %v722_v45, %v38_v44 }
 0x120   :  { %729 = vst.msk [vmem:[#allocation2] sm:$0xff] %vm36_vm0, %v727_v46 }
 0x127   :  { %v733_v47 = vld [vmem:[#allocation2] sm:$0xff] }
 0x128   :  { %v734_v48 = vmax.f32 %v733_v47, 0.0 }
 0x12a   :  { %v736_v49 = vpack.c.bf16 %v734_v48, %v734_v48  ;;  %735 = vst.msk [vmem:[#allocation3] sm:$0xff] %vm36_vm0, %v734_v48 }
 0x12c   :  { %1021 = vmatmul.mubr.msk.bf16.vlgmr.msra.gmra.mrb[8].mxu0 %vm36_vm0, %v736_v49 }
 0x12d   :  { %1107 = shalt.err (!%p1104_p4)
}
 0x12e   :  { %s1108_s8 = scalar_lea.hbm %s1450_s5, 128 }
 0x12f   :  { %p1109_p5 = scmp.ne.s32.totalorder %s1450_s5, %s1108_s8  ;;  %p1112_p6 = scmp.lt.u32.totalorder %s1108_s8, %s1450_s5 }
 0x131   :  { %p1114_p7 = pnand %p1112_p6, %p1109_p5 }
 0x133   :  { %1117 = shalt.err (!%p1114_p7)
}
 0x134   :  { %829 = dma.vmem_to_hbm [thread:$0]  %s827_s28, 128, %s1450_s5, [#allocation4]   ;;  %v913_v50 = vld [vmem:[%s1449_s4] ss:$0 sm:$0xff] }
 0x135   :  { %s1147_s17 = smov [#allocation5]  }
 0x136   :  { %s836_s18 = sshll.u32 %s1147_s17, 4  ;;  %s837_s18 = int_to_ptr.vmem [resolvable:$true] %s836_s18 }
 0x137   :  { %s1118_s19 = scalar_lea.vmem %s837_s18, 128  ;;  %p1123_p9 = scmp.lt.s32.totalorder %s837_s18, %s837_s18 }
 0x138   :  { %p1119_p8 = scmp.ne.s32.totalorder %s837_s18, %s1118_s19  ;;  %p1124_p10 = scmp.lt.s32.totalorder %s1118_s19, %s1118_s19 }
 0x13a   :  { %p1125_p11 = por %p1124_p10, %p1123_p9 }
 0x13c   :  { %p1126_p12 = pnand %p1125_p11, %p1119_p8 }
 0x1ff   :  { %v813_v51 = vpop.f32.mrb[8].mxu0 }
 0x200   :  { %v814_v52 = vadd.f32 %v913_v50, %v813_v51  ;;  %v1022_v53 = vpop.f32.mrb[9].mxu0 }
 0x201   :  { %v816_v54 = vpop.f32.mrb[10].mxu0 }
 0x202   :  { %819 = vst [vmem:[#allocation5] sm:$0xff] %v814_v52  ;;  %v1023_v55 = vpop.f32.mrb[11].mxu0 }
 0x203   :  { %1129 = shalt.err (!%p1126_p12)
}
 0x204   :  { %s1130_s4 = scalar_lea.hbm %s1451_s6, 128 }
 0x205   :  { %p1131_p13 = scmp.ne.s32.totalorder %s1451_s6, %s1130_s4  ;;  %p1134_p0 = scmp.lt.u32.totalorder %s1130_s4, %s1451_s6 }
 0x207   :  { %p1136_p1 = pnand %p1134_p0, %p1131_p13 }
 0x209   :  { %1139 = shalt.err (!%p1136_p1)
}
 0x20a   :  { %839 = dma.vmem_to_hbm [thread:$0]  %s837_s18, 128, %s1451_s6, [#allocation6]  }
 0x20b   :  { %1140 = dma.done.wait [#allocation4], 128  }
 0x20c   :  { %1141 = vsyncadd [#allocation4], 4294967168 }
 0x20d   :  { %1142 = dma.done.wait [#allocation6], 128  }
 0x20e   :  { %1143 = vsyncadd [#allocation6], 4294967168 }
 0x20f   :  { %846 = vsyncpa [#allocation4], 1 }
 0x210   :  { %847 = vsyncpa [#allocation6], 1 }

</bundles_post_ra>
